<compile_context>
chip_gen: v7x
topology: tpu7x:2x2x1
jax: 0.10.0
libtpu: 0.0.40
codegen_flags: <defaults>
</compile_context>

<pallas_src>
import functools

import jax
import jax.numpy as jnp
from jax.experimental import pallas as pl
from jax.experimental.pallas import tpu as pltpu

NEG_SLOPE = 0.2
EPS = 1e-5              # nn.InstanceNorm2d default eps
MAX_ROW_TILE = 4096     # row tile for the conv1 matmul (~1 MB bf16 blocks)


# ---------------------------------------------------------------------------
# Small helpers
# ---------------------------------------------------------------------------
def _choose_row_tile(rows, max_tile=MAX_ROW_TILE):
    """Pick a row tile; returns (tile, padded_rows)."""
    if rows <= max_tile:
        return rows, rows                       # single full-extent block
    padded = pl.cdiv(rows, max_tile) * max_tile
    return max_tile, padded


@functools.lru_cache(maxsize=1)
def _vmem_cap_bytes():
    """Generation-aware VMEM budget: leave headroom on 64 MiB parts (v7x),
    allow a larger scoped limit on 128 MiB parts (v5e/v6e)."""
    try:
        info = pltpu.get_tpu_info()
        cap = int(getattr(info, "vmem_capacity_bytes", 64 << 20))
    except Exception:   # conservative fallback
        cap = 64 << 20
    if cap <= (64 << 20):
        return 48 << 20          # v7x-class: leave Mosaic scratch headroom
    return 100 << 20             # v5e / v6e: 128 MiB physical


def _compiler_params(sem, block_nbytes, scratch_nbytes=0):
    """dimension_semantics + a computed VMEM budget (double-buffered blocks +
    kernel-internal f32 temps + headroom), clamped generation-aware."""
    need = 2 * sum(int(b) for b in block_nbytes) + int(scratch_nbytes) + (4 << 20)
    limit = int(min(max(need, 32 << 20), _vmem_cap_bytes()))
    return pltpu.CompilerParams(dimension_semantics=sem, vmem_limit_bytes=limit)


# ---------------------------------------------------------------------------
# Pallas kernels
# ---------------------------------------------------------------------------
def _conv1_kernel(x_ref, w_ref, b_ref, o_ref):
    # (TR, K)bf16 @ (K, 128)bf16 -> f32, + bias, LeakyReLU(0.2), store bf16.
    y = jnp.dot(x_ref[...], w_ref[...], preferred_element_type=jnp.float32)
    y = y + b_ref[...]
    o_ref[...] = jnp.where(y > 0, y, NEG_SLOPE * y).astype(o_ref.dtype)


def _conv2_fused_kernel(x_ref, w2_ref, b2_ref, w3_ref, taps_ref):
    # One batch element per grid step, full spatial extent P and all 256
    # channels in the block, so the per-instance/per-channel InstanceNorm
    # statistics are exact.  y2 stays entirely in VMEM (never written to HBM).
    # TODO(synk): for very large H*W (v7x's 64 MiB VMEM), tile the P axis and
    # switch to a two-pass (running sum / sum-of-squares) InstanceNorm.
    x = x_ref[0]                                               # (P, 512) bf16
    y = jnp.dot(x, w2_ref[...], preferred_element_type=jnp.float32)
    y = y + b2_ref[...]                                        # (P, 256) f32

    # Single-pass per-channel stats: var = E[y^2] - mean^2 (f32 reductions).
    inv_p = 1.0 / y.shape[0]
    mean = jnp.sum(y, axis=0, keepdims=True) * inv_p           # (1, 256)
    ex2 = jnp.sum(y * y, axis=0, keepdims=True) * inv_p
    var = jnp.maximum(ex2 - mean * mean, 0.0)
    scale = jax.lax.rsqrt(var + EPS)

    # Fused normalize + LeakyReLU over y.
    yn = (y - mean) * scale
    yl = jnp.where(yn > 0, yn, NEG_SLOPE * yn)

    # Channel contraction of the 3x3 / 1-out-channel final conv: (P,256)@(256,9).
    taps_ref[0] = jnp.dot(yl.astype(jnp.bfloat16), w3_ref[...],
                          preferred_element_type=jnp.float32)


# ---------------------------------------------------------------------------
# pallas_call wrappers
# ---------------------------------------------------------------------------
def conv1_lrelu(x, w, b):
    """x: (R, K) bf16 patches, w: (K, 128) bf16, b: (1, 128) f32 -> (R, 128) bf16."""
    R, K = x.shape
    N = w.shape[1]
    tr, Rp = _choose_row_tile(R)
    if Rp != R:
        x = jnp.pad(x, ((0, Rp - R), (0, 0)))
    blk = (tr * K * 2, K * N * 2, N * 4, tr * N * 2)
    out = pl.pallas_call(
        _conv1_kernel,
        out_shape=jax.ShapeDtypeStruct((Rp, N), jnp.bfloat16),
        grid=(Rp // tr,),
        in_specs=[pl.BlockSpec((tr, K), lambda i: (i, 0)),
                  pl.BlockSpec((K, N), lambda i: (0, 0)),
                  pl.BlockSpec((1, N), lambda i: (0, 0))],
        out_specs=pl.BlockSpec((tr, N), lambda i: (i, 0)),
        compiler_params=_compiler_params(("parallel",), blk),
    )(x, w, b)
    return out[:R] if Rp != R else out


def conv2_in_lrelu_conv3(x, w2, b2, w3t):
    """Fused Conv2d(128,256,k2,s2) + InstanceNorm2d(256) + LeakyReLU(0.2) +
    channel contraction of Conv2d(256,1,k3,p1,bias=False).

    x: (B, P, 512) bf16 patches, w2: (512, 256) bf16, b2: (1, 256) f32,
    w3t: (256, 9) bf16  ->  taps (B, P, 9) f32."""
    B, P, K = x.shape
    N = w2.shape[1]
    T = w3t.shape[1]
    blk = (P * K * 2, K * N * 2, N * 4, N * T * 2, P * T * 4)
    scratch = 3 * P * N * 4        # f32 y / normalized temps live in VMEM
    return pl.pallas_call(
        _conv2_fused_kernel,
        out_shape=jax.ShapeDtypeStruct((B, P, T), jnp.float32),
        grid=(B,),
        in_specs=[pl.BlockSpec((1, P, K), lambda b: (b, 0, 0)),
                  pl.BlockSpec((K, N), lambda b: (0, 0)),
                  pl.BlockSpec((1, N), lambda b: (0, 0)),
                  pl.BlockSpec((N, T), lambda b: (0, 0))],
        out_specs=pl.BlockSpec((1, P, T), lambda b: (b, 0, 0)),
        compiler_params=_compiler_params(("parallel",), blk, scratch),
    )(x, w2, b2, w3t)


# ---------------------------------------------------------------------------
# JAX glue (layout only; no heavy compute)
# ---------------------------------------------------------------------------
def shift_add_3x3(taps):
    """taps: (B, H, W, 9) f32 per-position channel contractions of the
    3x3/pad-1 conv; sum the 9 spatially shifted taps -> (B, H, W) f32."""
    B, H, W, _ = taps.shape
    tp = jnp.pad(taps, ((0, 0), (1, 1), (1, 1), (0, 0)))
    out = jnp.zeros((B, H, W), jnp.float32)
    for i in range(3):
        for j in range(3):
            out = out + tp[:, i:i + H, j:j + W, i * 3 + j]
    return out


# ---------------------------------------------------------------------------
# Parameters (deterministic synthetic init, PyTorch OIHW shapes then flattened)
# ---------------------------------------------------------------------------
def init_params(key, in_channels=33):
    k1, k2, k3, k4, k5 = jax.random.split(key, 5)
    w1 = jax.random.normal(k1, (128, in_channels, 2, 2), jnp.float32) * 0.05
    b1 = jax.random.normal(k2, (128,), jnp.float32) * 0.01
    w2 = jax.random.normal(k3, (256, 128, 2, 2), jnp.float32) * 0.05
    b2 = jax.random.normal(k4, (256,), jnp.float32) * 0.01
    w3 = jax.random.normal(k5, (1, 256, 3, 3), jnp.float32) * 0.05
    return {
        # conv1: (c, kh, kw) feature order -> (in_channels*4, 128)
        "w1": w1.reshape(128, -1).T.astype(jnp.bfloat16),
        "b1": b1.reshape(1, 128),
        # conv2: (kh, kw, c) feature order (matches contiguous space-to-depth)
        "w2": jnp.transpose(w2, (0, 2, 3, 1)).reshape(256, -1).T.astype(jnp.bfloat16),
        "b2": b2.reshape(1, 256),
        # final conv taps weight: (256, 9), tap index = kh*3 + kw
        "w3t": w3.reshape(256, 9).astype(jnp.bfloat16),
    }


# ---------------------------------------------------------------------------
# Forward pass
# ---------------------------------------------------------------------------
def discriminator_forward(params, img_A, img_B):
    x = jnp.concatenate([img_A, img_B], axis=1)               # (B, C, H, W), NCHW
    B, C, H, W = x.shape
    assert H % 4 == 0 and W % 4 == 0, "H and W must be divisible by 4"
    H2, W2, H4, W4 = H // 2, W // 2, H // 4, W // 4

    # Block 1 input: ONE shuffle NCHW -> (c, kh, kw) patches, fused bf16 cast.
    p1 = (x.astype(jnp.bfloat16)
           .reshape(B, C, H2, 2, W2, 2)
           .transpose(0, 2, 4, 1, 3, 5)                        # (B,H2,W2,C,2,2)
           .reshape(B * H2 * W2, C * 4))
    y1 = conv1_lrelu(p1, params["w1"], params["b1"])           # (B*H2*W2, 128) bf16
    y1 = y1.reshape(B, H2, W2, 128)                            # NHWC

    # Block 2 input: (kh, kw, c) space-to-depth — inner contiguous runs of
    # (kw, c) = 256 bf16 elements, so this glue copy streams.
    p2 = (y1.reshape(B, H4, 2, W4, 2, 128)
            .transpose(0, 1, 3, 2, 4, 5)                       # (B,H4,W4,2,2,128)
            .reshape(B, H4 * W4, 512))

    # Fused conv2 + InstanceNorm + LeakyReLU + final-conv channel contraction.
    taps = conv2_in_lrelu_conv3(p2, params["w2"], params["b2"], params["w3t"])

    # 3x3 / pad-1 spatial shift-and-add epilogue (tiny, stays in JAX).
    out = shift_add_3x3(taps.reshape(B, H4, W4, 9))            # (B, H4, W4) f32
    return out.reshape(B, 1, H4, W4)                           # NCHW, C=1


# ---------------------------------------------------------------------------
if __name__ == "__main__":
    key = jax.random.PRNGKey(0)
    kp, ka, kb = jax.random.split(key, 3)

    B, H, W = 2, 16, 16
    # channel split 1 + 32 = 33 (module default in_channels=33)
    img_A = jax.random.normal(ka, (B, 1, H, W), jnp.float32)
    img_B = jax.random.normal(kb, (B, 32, H, W), jnp.float32)

    params = init_params(kp, in_channels=33)

    fwd = jax.jit(discriminator_forward)
    out = fwd(params, img_A, img_B)
    out = jax.block_until_ready(out)

    assert out.shape == (B, 1, H // 4, W // 4), out.shape
    assert out.dtype == jnp.float32
    print("KERNEL_OK")
</pallas_src>

<mosaic_0001>
module attributes {stable_mosaic.version = 11 : i64} {
  func.func @_conv1_kernel(%arg0: i32, %arg1: memref<128x132xbf16, #tpu.memory_space<vmem>>, %arg2: memref<132x128xbf16, #tpu.memory_space<vmem>>, %arg3: memref<1x128xf32, #tpu.memory_space<vmem>>, %arg4: memref<128x128xbf16, #tpu.memory_space<vmem>>) attributes {dimension_semantics = [#tpu.dimension_semantics<parallel>], iteration_bounds = array<i64: 1>, scalar_prefetch = 0 : i64, scratch_operands = 0 : i64, tpu.core_type = #tpu.core_type<tc>, window_params = [{transform_indices = @transform_0, window_bounds = array<i64: 128, 132>}, {pipeline_mode = #tpu.pipeline_mode<synchronous>, transform_indices = @transform_1, window_bounds = array<i64: 132, 128>}, {pipeline_mode = #tpu.pipeline_mode<synchronous>, transform_indices = @transform_2, window_bounds = array<i64: 1, 128>}, {transform_indices = @transform_3, window_bounds = array<i64: 128, 128>}]} {
    %c0 = arith.constant 0 : index
    %c0_0 = arith.constant 0 : index
    %0 = vector.load %arg1[%c0, %c0_0] : memref<128x132xbf16, #tpu.memory_space<vmem>>, vector<128x132xbf16>
    %c0_1 = arith.constant 0 : index
    %c0_2 = arith.constant 0 : index
    %1 = vector.load %arg2[%c0_1, %c0_2] : memref<132x128xbf16, #tpu.memory_space<vmem>>, vector<132x128xbf16>
    %cst = arith.constant dense<0.000000e+00> : vector<128x128xf32>
    %2 = tpu.matmul %0, %1, %cst {dimension_numbers = #tpu.dot_dimension_numbers<[1], [0], [0], [1], [0, 0, 1, 1], [], []>} : vector<128x132xbf16>, vector<132x128xbf16>, vector<128x128xf32> -> vector<128x128xf32>
    %c0_3 = arith.constant 0 : index
    %c0_4 = arith.constant 0 : index
    %3 = vector.load %arg3[%c0_3, %c0_4] : memref<1x128xf32, #tpu.memory_space<vmem>>, vector<1x128xf32>
    %4 = vector.broadcast %3 : vector<1x128xf32> to vector<128x128xf32>
    %5 = arith.addf %2, %4 : vector<128x128xf32>
    %cst_5 = arith.constant 0.000000e+00 : f32
    %6 = vector.broadcast %cst_5 : f32 to vector<128x128xf32>
    %7 = arith.cmpf ogt, %5, %6 : vector<128x128xf32>
    %cst_6 = arith.constant 2.000000e-01 : f32
    %8 = vector.broadcast %cst_6 : f32 to vector<128x128xf32>
    %9 = arith.mulf %8, %5 : vector<128x128xf32>
    %10 = arith.select %7, %5, %9 : vector<128x128xi1>, vector<128x128xf32>
    %11 = arith.truncf %10 : vector<128x128xf32> to vector<128x128xbf16>
    %c0_7 = arith.constant 0 : index
    %c0_8 = arith.constant 0 : index
    %12 = vector.load %arg4[%c0_7, %c0_8] : memref<128x128xbf16, #tpu.memory_space<vmem>>, vector<128x128xbf16>
    tpu.vector_store %arg4[%c0_7, %c0_8], %11 {strides = array<i32>} : memref<128x128xbf16, #tpu.memory_space<vmem>>, vector<128x128xbf16>,
    return
  }
  func.func @transform_0(%arg0: i32) -> (i32, i32) {
    %c0_i32 = arith.constant 0 : i32
    %c0_i32_0 = arith.constant 0 : i32
    return %arg0, %c0_i32 : i32, i32
  }
  func.func @transform_1(%arg0: i32) -> (i32, i32) {
    %c0_i32 = arith.constant 0 : i32
    %c0_i32_0 = arith.constant 0 : i32
    %c0_i32_1 = arith.constant 0 : i32
    return %c0_i32, %c0_i32_0 : i32, i32
  }
  func.func @transform_2(%arg0: i32) -> (i32, i32) {
    %c0_i32 = arith.constant 0 : i32
    %c0_i32_0 = arith.constant 0 : i32
    %c0_i32_1 = arith.constant 0 : i32
    return %c0_i32, %c0_i32_0 : i32, i32
  }
  func.func @transform_3(%arg0: i32) -> (i32, i32) {
    %c0_i32 = arith.constant 0 : i32
    %c0_i32_0 = arith.constant 0 : i32
    return %arg0, %c0_i32 : i32, i32
  }
}

module attributes {stable_mosaic.version = 11 : i64} {
  func.func @_conv2_fused_kernel(%arg0: i32, %arg1: memref<1x16x512xbf16, #tpu.memory_space<vmem>>, %arg2: memref<512x256xbf16, #tpu.memory_space<vmem>>, %arg3: memref<1x256xf32, #tpu.memory_space<vmem>>, %arg4: memref<256x9xbf16, #tpu.memory_space<vmem>>, %arg5: memref<1x16x9xf32, #tpu.memory_space<vmem>>) attributes {dimension_semantics = [#tpu.dimension_semantics<parallel>], iteration_bounds = array<i64: 2>, scalar_prefetch = 0 : i64, scratch_operands = 0 : i64, tpu.core_type = #tpu.core_type<tc>, window_params = [{transform_indices = @transform_0, window_bounds = array<i64: 1, 16, 512>}, {pipeline_mode = #tpu.pipeline_mode<synchronous>, transform_indices = @transform_1, window_bounds = array<i64: 512, 256>}, {pipeline_mode = #tpu.pipeline_mode<synchronous>, transform_indices = @transform_2, window_bounds = array<i64: 1, 256>}, {pipeline_mode = #tpu.pipeline_mode<synchronous>, transform_indices = @transform_3, window_bounds = array<i64: 256, 9>}, {transform_indices = @transform_4, window_bounds = array<i64: 1, 16, 9>}]} {
    %c0 = arith.constant 0 : index
    %c0_0 = arith.constant 0 : index
    %c0_1 = arith.constant 0 : index
    %0 = vector.load %arg1[%c0, %c0_0, %c0_1] : memref<1x16x512xbf16, #tpu.memory_space<vmem>>, vector<1x16x512xbf16>
    %1 = vector.shape_cast %0 : vector<1x16x512xbf16> to vector<16x512xbf16>
    %c0_2 = arith.constant 0 : index
    %c0_3 = arith.constant 0 : index
    %2 = vector.load %arg2[%c0_2, %c0_3] : memref<512x256xbf16, #tpu.memory_space<vmem>>, vector<512x256xbf16>
    %cst = arith.constant dense<0.000000e+00> : vector<16x256xf32>
    %3 = tpu.matmul %1, %2, %cst {dimension_numbers = #tpu.dot_dimension_numbers<[1], [0], [0], [1], [0, 0, 1, 1], [], []>} : vector<16x512xbf16>, vector<512x256xbf16>, vector<16x256xf32> -> vector<16x256xf32>
    %c0_4 = arith.constant 0 : index
    %c0_5 = arith.constant 0 : index
    %4 = vector.load %arg3[%c0_4, %c0_5] : memref<1x256xf32, #tpu.memory_space<vmem>>, vector<1x256xf32>
    %5 = vector.broadcast %4 : vector<1x256xf32> to vector<16x256xf32>
    %6 = arith.addf %3, %5 : vector<16x256xf32>
    %cst_6 = arith.constant dense<0.000000e+00> : vector<256xf32>
    %7 = vector.multi_reduction <add>, %6, %cst_6 [0] : vector<16x256xf32> to vector<256xf32>
    %8 = vector.shape_cast %7 : vector<256xf32> to vector<1x256xf32>
    %cst_7 = arith.constant 6.250000e-02 : f32
    %9 = vector.broadcast %cst_7 : f32 to vector<1x256xf32>
    %10 = arith.mulf %8, %9 : vector<1x256xf32>
    %11 = arith.mulf %6, %6 : vector<16x256xf32>
    %cst_8 = arith.constant dense<0.000000e+00> : vector<256xf32>
    %12 = vector.multi_reduction <add>, %11, %cst_8 [0] : vector<16x256xf32> to vector<256xf32>
    %13 = vector.shape_cast %12 : vector<256xf32> to vector<1x256xf32>
    %cst_9 = arith.constant 6.250000e-02 : f32
    %14 = vector.broadcast %cst_9 : f32 to vector<1x256xf32>
    %15 = arith.mulf %13, %14 : vector<1x256xf32>
    %16 = arith.mulf %10, %10 : vector<1x256xf32>
    %17 = arith.subf %15, %16 : vector<1x256xf32>
    %cst_10 = arith.constant 0.000000e+00 : f32
    %18 = vector.broadcast %cst_10 : f32 to vector<1x256xf32>
    %19 = arith.maximumf %17, %18 : vector<1x256xf32>
    %cst_11 = arith.constant 9.99999974E-6 : f32
    %20 = vector.broadcast %cst_11 : f32 to vector<1x256xf32>
    %21 = arith.addf %19, %20 : vector<1x256xf32>
    %22 = math.rsqrt %21 : vector<1x256xf32>
    %23 = vector.broadcast %10 : vector<1x256xf32> to vector<16x256xf32>
    %24 = arith.subf %6, %23 : vector<16x256xf32>
    %25 = vector.broadcast %22 : vector<1x256xf32> to vector<16x256xf32>
    %26 = arith.mulf %24, %25 : vector<16x256xf32>
    %cst_12 = arith.constant 0.000000e+00 : f32
    %27 = vector.broadcast %cst_12 : f32 to vector<16x256xf32>
    %28 = arith.cmpf ogt, %26, %27 : vector<16x256xf32>
    %cst_13 = arith.constant 2.000000e-01 : f32
    %29 = vector.broadcast %cst_13 : f32 to vector<16x256xf32>
    %30 = arith.mulf %29, %26 : vector<16x256xf32>
    %31 = arith.select %28, %26, %30 : vector<16x256xi1>, vector<16x256xf32>
    %32 = arith.truncf %31 : vector<16x256xf32> to vector<16x256xbf16>
    %c0_14 = arith.constant 0 : index
    %c0_15 = arith.constant 0 : index
    %33 = vector.load %arg4[%c0_14, %c0_15] : memref<256x9xbf16, #tpu.memory_space<vmem>>, vector<256x9xbf16>
    %cst_16 = arith.constant dense<0.000000e+00> : vector<16x9xf32>
    %34 = tpu.matmul %32, %33, %cst_16 {dimension_numbers = #tpu.dot_dimension_numbers<[1], [0], [0], [1], [0, 0, 1, 1], [], []>} : vector<16x256xbf16>, vector<256x9xbf16>, vector<16x9xf32> -> vector<16x9xf32>
    %c0_17 = arith.constant 0 : index
    %c0_18 = arith.constant 0 : index
    %c0_19 = arith.constant 0 : index
    %35 = vector.load %arg5[%c0_17, %c0_18, %c0_19] : memref<1x16x9xf32, #tpu.memory_space<vmem>>, vector<1x16x9xf32>
    %36 = vector.shape_cast %35 : vector<1x16x9xf32> to vector<16x9xf32>
    %37 = vector.shape_cast %34 : vector<16x9xf32> to vector<1x16x9xf32>
    tpu.vector_store %arg5[%c0_17, %c0_18, %c0_19], %37 {strides = array<i32>} : memref<1x16x9xf32, #tpu.memory_space<vmem>>, vector<1x16x9xf32>,
    return
  }
  func.func @transform_0(%arg0: i32) -> (i32, i32, i32) {
    %c0_i32 = arith.constant 0 : i32
    %c0_i32_0 = arith.constant 0 : i32
    %c0_i32_1 = arith.constant 0 : i32
    return %arg0, %c0_i32, %c0_i32_0 : i32, i32, i32
  }
  func.func @transform_1(%arg0: i32) -> (i32, i32) {
    %c0_i32 = arith.constant 0 : i32
    %c0_i32_0 = arith.constant 0 : i32
    %c0_i32_1 = arith.constant 0 : i32
    return %c0_i32, %c0_i32_0 : i32, i32
  }
  func.func @transform_2(%arg0: i32) -> (i32, i32) {
    %c0_i32 = arith.constant 0 : i32
    %c0_i32_0 = arith.constant 0 : i32
    %c0_i32_1 = arith.constant 0 : i32
    return %c0_i32, %c0_i32_0 : i32, i32
  }
  func.func @transform_3(%arg0: i32) -> (i32, i32) {
    %c0_i32 = arith.constant 0 : i32
    %c0_i32_0 = arith.constant 0 : i32
    %c0_i32_1 = arith.constant 0 : i32
    return %c0_i32, %c0_i32_0 : i32, i32
  }
  func.func @transform_4(%arg0: i32) -> (i32, i32, i32) {
    %c0_i32 = arith.constant 0 : i32
    %c0_i32_0 = arith.constant 0 : i32
    %c0_i32_1 = arith.constant 0 : i32
    return %arg0, %c0_i32, %c0_i32_0 : i32, i32, i32
  }
}

</mosaic_0001>

<bundles_post_ra>
// kernel: discriminator_forward.2
= control target key start
LH: loop header
LB: loop body
LE: loop exit
PB: predicated region body
PF: predicated region fallthrough
CT: control target
= control target key end

     0   :  { %v601_v0 = vmov 0   ;;  %vm178_vm0 = vcmask 31744   ;;  %vm203_vm1 = vcmask 1041408   ;;  %s750_s1 = inlined_call_operand.vmem [shape: bf16[132,128], index: 1, kind: input, shape index: {}]   ;;  %s751_s0 = inlined_call_operand.vmem [shape: bf16[128,132], index: 0, kind: input, shape index: {}]   ;;  %s752_s2 = inlined_call_operand.vmem [shape: f32[1,128], index: 2, kind: input, shape index: {}]   ;;  %s753_s3 = inlined_call_operand.vmem [shape: bf16[128,128], index: 3, kind: output, shape index: {}]  }
   0x1   :  { %207 = vmatprep.subr.bf16.mxu0 %v601_v0  ;;  %549 = vmatprep.subr.bf16.mxu1 %v601_v0  ;;  %v568_v1 = vld [vmem:[%s750_s1] sm:$0xff]   ;;  %v569_v2 = vld [vmem:[%s750_s1 + $0x8] sm:$0xff]   ;;  %v570_v3 = vld [vmem:[%s750_s1 + $0x10] sm:$0xff]  }
   0x2   :  { %208 = vmatpush1.bf16.msra.mxu0 %v568_v1  ;;  %558 = vmatpush1.bf16.msra.mxu1 %v568_v1  ;;  %v579_v4 = vld [vmem:[%s751_s0 + $0x4] ss:$8 sps:$4 sm:$0xff]   ;;  %v571_v5 = vld [vmem:[%s750_s1 + $0x18] sm:$0xff]   ;;  %v574_v9 = vld [vmem:[%s750_s1 + $0x30] sm:$0xff]  }
   0x3   :  { %209 = vmatprep.subr.bf16.mxu0 %v601_v0  ;;  %550 = vmatprep.subr.bf16.mxu1 %v601_v0  ;;  %v582_v6 = vld [vmem:[%s751_s0 + $0x44] ss:$8 sps:$4 sm:$0xff]   ;;  %v575_v10 = vld [vmem:[%s750_s1 + $0x38] sm:$0xff]   ;;  %v576_v11 = vld [vmem:[%s750_s1 + $0x40] ss:$0 sps:$4 sm:$0x33]  }
   0x4   :  { %462 = vmatprep.mubr.msk.bf16.mxu0 %vm178_vm0, %v579_v4  ;;  %466 = vmatprep.mubr.msk.bf16.mxu1 %vm178_vm0, %v582_v6  ;;  %v572_v7 = vld [vmem:[%s750_s1 + $0x20] sm:$0xff]   ;;  %v573_v8 = vld [vmem:[%s750_s1 + $0x28] sm:$0xff]   ;;  %v205_v12 = vsel %vm203_vm1, %v576_v11, 0  ;;  %v583_v15 = vld [vmem:[%s751_s0 + $0x14] ss:$8 sps:$4 sm:$0xff]  }
   0x5   :  { %v577_v13 = vld [vmem:[%s751_s0] ss:$8 sps:$4 sm:$0xff]   ;;  %v585_v16 = vld [vmem:[%s751_s0 + $0x54] ss:$8 sps:$4 sm:$0xff]   ;;  %v587_v17 = vld [vmem:[%s751_s0 + $0x10] ss:$8 sps:$4 sm:$0xff]  }
   0x6   :  { %210 = vmatpush1.bf16.msra.mxu0 %v569_v2  ;;  %559 = vmatpush1.bf16.msra.mxu1 %v569_v2  ;;  %v580_v14 = vld [vmem:[%s751_s0 + $0x40] ss:$8 sps:$4 sm:$0xff]   ;;  %v588_v18 = vld [vmem:[%s751_s0 + $0x50] ss:$8 sps:$4 sm:$0xff]   ;;  %v589_v19 = vld [vmem:[%s751_s0 + $0x24] ss:$8 sps:$4 sm:$0xff]  }
   0x7   :  { %211 = vmatprep.subr.bf16.mxu0 %v601_v0  ;;  %551 = vmatprep.subr.bf16.mxu1 %v601_v0  ;;  %v591_v20 = vld [vmem:[%s751_s0 + $0x64] ss:$8 sps:$4 sm:$0xff]   ;;  %v593_v21 = vld [vmem:[%s751_s0 + $0x20] ss:$8 sps:$4 sm:$0xff]   ;;  %v595_v23 = vld [vmem:[%s751_s0 + $0x34] ss:$8 sps:$4 sm:$0xff]  }
   0x8   :  { %v594_v22 = vld [vmem:[%s751_s0 + $0x60] ss:$8 sps:$4 sm:$0xff]   ;;  %v597_v24 = vld [vmem:[%s751_s0 + $0x74] ss:$8 sps:$4 sm:$0xff]   ;;  %v599_v25 = vld [vmem:[%s751_s0 + $0x30] ss:$8 sps:$4 sm:$0xff]  }
   0x9   :  { %v600_v26 = vld [vmem:[%s751_s0 + $0x70] ss:$8 sps:$4 sm:$0xff]   ;;  %v708_v27 = vld [vmem:[%s752_s2] ss:$0 sm:$0xff] }
   0xa   :  { %212 = vmatpush1.bf16.msra.mxu0 %v570_v3  ;;  %560 = vmatpush1.bf16.msra.mxu1 %v570_v3 }
   0xb   :  { %213 = vmatprep.subr.bf16.mxu0 %v601_v0  ;;  %552 = vmatprep.subr.bf16.mxu1 %v601_v0 }
   0xe   :  { %214 = vmatpush1.bf16.msra.mxu0 %v571_v5  ;;  %561 = vmatpush1.bf16.msra.mxu1 %v571_v5 }
   0xf   :  { %215 = vmatprep.subr.bf16.mxu0 %v601_v0  ;;  %553 = vmatprep.subr.bf16.mxu1 %v601_v0 }
  0x12   :  { %216 = vmatpush1.bf16.msra.mxu0 %v572_v7  ;;  %562 = vmatpush1.bf16.msra.mxu1 %v572_v7 }
  0x13   :  { %217 = vmatprep.subr.bf16.mxu0 %v601_v0  ;;  %554 = vmatprep.subr.bf16.mxu1 %v601_v0 }
  0x16   :  { %218 = vmatpush1.bf16.msra.mxu0 %v573_v8  ;;  %563 = vmatpush1.bf16.msra.mxu1 %v573_v8 }
  0x17   :  { %219 = vmatprep.subr.bf16.mxu0 %v601_v0  ;;  %555 = vmatprep.subr.bf16.mxu1 %v601_v0 }
  0x1a   :  { %220 = vmatpush1.bf16.msra.mxu0 %v574_v9  ;;  %564 = vmatpush1.bf16.msra.mxu1 %v574_v9 }
  0x1b   :  { %221 = vmatprep.subr.bf16.mxu0 %v601_v0  ;;  %556 = vmatprep.subr.bf16.mxu1 %v601_v0 }
  0x1e   :  { %222 = vmatpush1.bf16.msra.mxu0 %v575_v10  ;;  %565 = vmatpush1.bf16.msra.mxu1 %v575_v10 }
  0x1f   :  { %223 = vmatprep.subr.bf16.mxu0 %v601_v0  ;;  %557 = vmatprep.subr.bf16.mxu1 %v601_v0 }
  0x22   :  { %224 = vmatpush1.bf16.msra.mxu0 %v205_v12  ;;  %566 = vmatpush1.bf16.msra.mxu1 %v205_v12 }
  0x25   :  { %240 = vmatmul.mubr.bf16.vlgmr.msra.gmra.mrb[0].mxu0 %v577_v13  ;;  %272 = vmatmul.mubr.bf16.vlgmr.msra.gmra.mrb[0].mxu1 %v580_v14 }
  0x26   :  { %463 = vmatprep.mubr.msk.bf16.mxu0 %vm178_vm0, %v583_v15  ;;  %467 = vmatprep.mubr.msk.bf16.mxu1 %vm178_vm0, %v585_v16 }
  0x2d   :  { %248 = vmatmul.mubr.bf16.gmra.mrb[4].mxu0 %v587_v17  ;;  %280 = vmatmul.mubr.bf16.gmra.mrb[4].mxu1 %v588_v18 }
  0x2e   :  { %464 = vmatprep.mubr.msk.bf16.mxu0 %vm178_vm0, %v589_v19  ;;  %468 = vmatprep.mubr.msk.bf16.mxu1 %vm178_vm0, %v591_v20 }
  0x35   :  { %256 = vmatmul.mubr.bf16.gmra.mrb[8].mxu0 %v593_v21  ;;  %288 = vmatmul.mubr.bf16.gmra.mrb[8].mxu1 %v594_v22 }
  0x36   :  { %465 = vmatprep.mubr.msk.bf16.mxu0 %vm178_vm0, %v595_v23  ;;  %469 = vmatprep.mubr.msk.bf16.mxu1 %vm178_vm0, %v597_v24 }
  0x3d   :  { %264 = vmatmul.mubr.bf16.gmra.mrb[12].mxu0 %v599_v25  ;;  %296 = vmatmul.mubr.bf16.gmra.mrb[12].mxu1 %v600_v26 }
  0xf8   :  { %v241_v28 = vpop.f32.mrb[0].mxu0  ;;  %v273_v29 = vpop.f32.mrb[0].mxu1 }
  0xf9   :  { %v242_v30 = vadd.f32 %v708_v27, %v241_v28  ;;  %v274_v31 = vadd.f32 %v708_v27, %v273_v29  ;;  %v243_v32 = vpop.f32.mrb[1].mxu0  ;;  %v275_v33 = vpop.f32.mrb[1].mxu1 }
  0xfa   :  { %v244_v34 = vpop.f32.mrb[2].mxu0  ;;  %v276_v35 = vpop.f32.mrb[2].mxu1 }
  0xfb   :  { %v320_v36 = vmul.f32 0.2, %v242_v30  ;;  %v328_v37 = vmul.f32 0.2, %v274_v31  ;;  %v245_v38 = vadd.f32 %v708_v27, %v244_v34  ;;  %v277_v39 = vadd.f32 %v708_v27, %v276_v35  ;;  %v246_v40 = vpop.f32.mrb[3].mxu0  ;;  %v278_v41 = vpop.f32.mrb[3].mxu1 }
  0xfc   :  { %vm304_vm2 = vcmp.gt.f32.partialorder %v242_v30, 0.0  ;;  %vm312_vm3 = vcmp.gt.f32.partialorder %v274_v31, 0.0 }
  0xfd   :  { %vm305_vm4 = vcmp.gt.f32.partialorder %v245_v38, 0.0  ;;  %v321_v42 = vmul.f32 0.2, %v245_v38  ;;  %vm313_vm5 = vcmp.gt.f32.partialorder %v277_v39, 0.0  ;;  %v329_v43 = vmul.f32 0.2, %v277_v39 }
  0xfe   :  { %v336_v44 = vsel %vm304_vm2, %v242_v30, %v320_v36  ;;  %v344_v45 = vsel %vm312_vm3, %v274_v31, %v328_v37 }
  0xff   :  { %v337_v46 = vsel %vm305_vm4, %v245_v38, %v321_v42  ;;  %v345_v47 = vsel %vm313_vm5, %v277_v39, %v329_v43 }
 0x100   :  { %v249_v48 = vpop.f32.mrb[4].mxu0  ;;  %v281_v49 = vpop.f32.mrb[4].mxu1  ;;  %v505_v50 = vpack.c.bf16 %v337_v46, %v336_v44  ;;  %v525_v51 = vpack.c.bf16 %v345_v47, %v344_v45 }
 0x101   :  { %v250_v52 = vadd.f32 %v708_v27, %v249_v48  ;;  %v282_v53 = vadd.f32 %v708_v27, %v281_v49  ;;  %v251_v54 = vpop.f32.mrb[5].mxu0  ;;  %v283_v55 = vpop.f32.mrb[5].mxu1 }
 0x102   :  { %v252_v56 = vpop.f32.mrb[6].mxu0  ;;  %v284_v57 = vpop.f32.mrb[6].mxu1  ;;  %506 = vst [vmem:[%s753_s3] sm:$0xff] %v505_v50   ;;  %545 = vst [vmem:[%s753_s3 + $0x20] sm:$0xff] %v525_v51  }
 0x103   :  { %v322_v58 = vmul.f32 0.2, %v250_v52  ;;  %v330_v59 = vmul.f32 0.2, %v282_v53  ;;  %v253_v60 = vadd.f32 %v708_v27, %v252_v56  ;;  %v285_v61 = vadd.f32 %v708_v27, %v284_v57  ;;  %v254_v62 = vpop.f32.mrb[7].mxu0  ;;  %v286_v63 = vpop.f32.mrb[7].mxu1 }
 0x104   :  { %vm306_vm6 = vcmp.gt.f32.partialorder %v250_v52, 0.0  ;;  %vm314_vm7 = vcmp.gt.f32.partialorder %v282_v53, 0.0 }
 0x105   :  { %vm307_vm8 = vcmp.gt.f32.partialorder %v253_v60, 0.0  ;;  %v323_v0 = vmul.f32 0.2, %v253_v60  ;;  %vm315_vm9 = vcmp.gt.f32.partialorder %v285_v61, 0.0  ;;  %v331_v1 = vmul.f32 0.2, %v285_v61 }
 0x106   :  { %v338_v2 = vsel %vm306_vm6, %v250_v52, %v322_v58  ;;  %v346_v3 = vsel %vm314_vm7, %v282_v53, %v330_v59 }
 0x107   :  { %v339_v4 = vsel %vm307_vm8, %v253_v60, %v323_v0  ;;  %v347_v5 = vsel %vm315_vm9, %v285_v61, %v331_v1 }
 0x108   :  { %v257_v6 = vpop.f32.mrb[8].mxu0  ;;  %v289_v7 = vpop.f32.mrb[8].mxu1  ;;  %v510_v8 = vpack.c.bf16 %v339_v4, %v338_v2  ;;  %v530_v9 = vpack.c.bf16 %v347_v5, %v346_v3 }
 0x109   :  { %v258_v10 = vadd.f32 %v708_v27, %v257_v6  ;;  %v290_v11 = vadd.f32 %v708_v27, %v289_v7  ;;  %v259_v12 = vpop.f32.mrb[9].mxu0  ;;  %v291_v13 = vpop.f32.mrb[9].mxu1 }
 0x10a   :  { %v260_v14 = vpop.f32.mrb[10].mxu0  ;;  %v292_v15 = vpop.f32.mrb[10].mxu1  ;;  %542 = vst [vmem:[%s753_s3 + $0x8] sm:$0xff] %v510_v8   ;;  %546 = vst [vmem:[%s753_s3 + $0x28] sm:$0xff] %v530_v9  }
 0x10b   :  { %v324_v16 = vmul.f32 0.2, %v258_v10  ;;  %v332_v17 = vmul.f32 0.2, %v290_v11  ;;  %v261_v18 = vadd.f32 %v708_v27, %v260_v14  ;;  %v293_v19 = vadd.f32 %v708_v27, %v292_v15  ;;  %v262_v20 = vpop.f32.mrb[11].mxu0  ;;  %v294_v21 = vpop.f32.mrb[11].mxu1 }
 0x10c   :  { %vm308_vm10 = vcmp.gt.f32.partialorder %v258_v10, 0.0  ;;  %vm316_vm11 = vcmp.gt.f32.partialorder %v290_v11, 0.0 }
 0x10d   :  { %vm309_vm12 = vcmp.gt.f32.partialorder %v261_v18, 0.0  ;;  %v325_v22 = vmul.f32 0.2, %v261_v18  ;;  %vm317_vm13 = vcmp.gt.f32.partialorder %v293_v19, 0.0  ;;  %v333_v23 = vmul.f32 0.2, %v293_v19 }
 0x10e   :  { %v340_v24 = vsel %vm308_vm10, %v258_v10, %v324_v16  ;;  %v348_v25 = vsel %vm316_vm11, %v290_v11, %v332_v17 }
 0x10f   :  { %v341_v26 = vsel %vm309_vm12, %v261_v18, %v325_v22  ;;  %v349_v28 = vsel %vm317_vm13, %v293_v19, %v333_v23 }
 0x110   :  { %v265_v29 = vpop.f32.mrb[12].mxu0  ;;  %v297_v30 = vpop.f32.mrb[12].mxu1  ;;  %v515_v31 = vpack.c.bf16 %v341_v26, %v340_v24  ;;  %v535_v32 = vpack.c.bf16 %v349_v28, %v348_v25 }
 0x111   :  { %v266_v33 = vadd.f32 %v708_v27, %v265_v29  ;;  %v298_v34 = vadd.f32 %v708_v27, %v297_v30  ;;  %v267_v35 = vpop.f32.mrb[13].mxu0  ;;  %v299_v36 = vpop.f32.mrb[13].mxu1 }
 0x112   :  { %v268_v37 = vpop.f32.mrb[14].mxu0  ;;  %v300_v38 = vpop.f32.mrb[14].mxu1  ;;  %543 = vst [vmem:[%s753_s3 + $0x10] sm:$0xff] %v515_v31   ;;  %547 = vst [vmem:[%s753_s3 + $0x30] sm:$0xff] %v535_v32  }
 0x113   :  { %v326_v39 = vmul.f32 0.2, %v266_v33  ;;  %v334_v40 = vmul.f32 0.2, %v298_v34  ;;  %v269_v41 = vadd.f32 %v708_v27, %v268_v37  ;;  %v301_v42 = vadd.f32 %v708_v27, %v300_v38  ;;  %v270_v43 = vpop.f32.mrb[15].mxu0  ;;  %v302_v44 = vpop.f32.mrb[15].mxu1 }
 0x114   :  { %vm310_vm14 = vcmp.gt.f32.partialorder %v266_v33, 0.0  ;;  %vm318_vm15 = vcmp.gt.f32.partialorder %v298_v34, 0.0 }
 0x115   :  { %vm311_vm0 = vcmp.gt.f32.partialorder %v269_v41, 0.0  ;;  %v327_v45 = vmul.f32 0.2, %v269_v41  ;;  %vm319_vm1 = vcmp.gt.f32.partialorder %v301_v42, 0.0  ;;  %v335_v46 = vmul.f32 0.2, %v301_v42 }
 0x116   :  { %v342_v47 = vsel %vm310_vm14, %v266_v33, %v326_v39  ;;  %v350_v48 = vsel %vm318_vm15, %v298_v34, %v334_v40 }
 0x117   :  { %v343_v49 = vsel %vm311_vm0, %v269_v41, %v327_v45  ;;  %v351_v50 = vsel %vm319_vm1, %v301_v42, %v335_v46 }
 0x118   :  { %v520_v51 = vpack.c.bf16 %v343_v49, %v342_v47  ;;  %v540_v52 = vpack.c.bf16 %v351_v50, %v350_v48 }
 0x11a   :  { %544 = vst [vmem:[%s753_s3 + $0x18] sm:$0xff] %v520_v51   ;;  %548 = vst [vmem:[%s753_s3 + $0x38] sm:$0xff] %v540_v52  }

// kernel: discriminator_forward.3
= control target key start
LH: loop header
LB: loop body
LE: loop exit
PB: predicated region body
PF: predicated region fallthrough
CT: control target
= control target key end

     0   :  { %s1290_s15 = smov 0   ;;  %s1564_s0 = inlined_call_operand.vmem [shape: bf16[2,16,512], index: 0, kind: input, shape index: {}]   ;;  %s1565_s1 = inlined_call_operand.vmem [shape: bf16[512,256], index: 1, kind: input, shape index: {}]   ;;  %s1566_s2 = inlined_call_operand.vmem [shape: f32[1,256], index: 2, kind: input, shape index: {}]   ;;  %s1567_s3 = inlined_call_operand.vmem [shape: bf16[256,9], index: 3, kind: input, shape index: {}]   ;;  %s1568_s4 = inlined_call_operand.vmem [shape: f32[2,16,9], index: 4, kind: output, shape index: {}]  }
   0x1 LB: > { %s1000_s16 = sadd.s32 4294967295, %s1263_s15   ;;  %p1004_p0 = scmp.ge.s32.totalorder %s1263_s15, 1  ;;  %s1263_s15 = sphi %s1290_s15, %s14_s15  }
   0x2   : > { %p162_p1 = scmp.lt.s32.totalorder %s1263_s15, 3 }
   0x4   : > { %p163_p2 = pnand %p1004_p0, %p162_p1 }
   0x5   : > { %v1135_v0 = vld [vmem:[%s1565_s1 + $0x4] ss:$8 sps:$4 sm:$0xff] (!%p163_p2)   ;;  %v1139_v2 = vld [vmem:[%s1565_s1] ss:$8 sps:$4 sm:$0xff] (!%p163_p2)   ;;  %v1141_v4 = vld [vmem:[%s1565_s1 + $0x14] ss:$8 sps:$4 sm:$0xff] (!%p163_p2)  }
   0x6   : > { %166 = sbr.rel (%p163_p2) target bundleno = 550 (0x226), region = 36  ;;  %v1137_v1 = vld [vmem:[%s1565_s1 + $0x104] ss:$8 sps:$4 sm:$0xff] (!%p163_p2)   ;;  %619 = vmatprep.subr.bf16.mxu1 (!%p163_p2), %v1135_v0  ;;  %v1140_v3 = vld [vmem:[%s1565_s1 + $0x100] ss:$8 sps:$4 sm:$0xff] (!%p163_p2)   ;;  %p188_p3 = scmp.lt.s32.totalorder (!%p163_p2), %s1000_s16, 1 }
   0x7   : > { %662 = vmatprep.subr.bf16.mxu0 (!%p163_p2), %v1137_v1  ;;  %620 = vmatpush1.bf16.msra.mxu1 (!%p163_p2), %v1139_v2  ;;  %v1143_v5 = vld [vmem:[%s1565_s1 + $0x114] ss:$8 sps:$4 sm:$0xff] (!%p163_p2)   ;;  %v1145_v6 = vld [vmem:[%s1565_s1 + $0x10] ss:$8 sps:$4 sm:$0xff] (!%p163_p2)   ;;  %v1147_v8 = vld [vmem:[%s1565_s1 + $0x24] ss:$8 sps:$4 sm:$0xff] (!%p163_p2)  }
   0x8   : > { %663 = vmatpush1.bf16.msra.mxu0 (!%p163_p2), %v1140_v3  ;;  %621 = vmatprep.subr.bf16.mxu1 (!%p163_p2), %v1141_v4  ;;  %v1146_v7 = vld [vmem:[%s1565_s1 + $0x110] ss:$8 sps:$4 sm:$0xff] (!%p163_p2)   ;;  %v1149_v9 = vld [vmem:[%s1565_s1 + $0x124] ss:$8 sps:$4 sm:$0xff] (!%p163_p2)   ;;  %v1151_v10 = vld [vmem:[%s1565_s1 + $0x20] ss:$8 sps:$4 sm:$0xff] (!%p163_p2)  }
   0x9   : > { %664 = vmatprep.subr.bf16.mxu0 (!%p163_p2), %v1143_v5  ;;  %v1152_v11 = vld [vmem:[%s1565_s1 + $0x120] ss:$8 sps:$4 sm:$0xff] (!%p163_p2)   ;;  %v1153_v12 = vld [vmem:[%s1565_s1 + $0x34] ss:$8 sps:$4 sm:$0xff] (!%p163_p2)   ;;  %v1157_v14 = vld [vmem:[%s1565_s1 + $0x30] ss:$8 sps:$4 sm:$0xff] (!%p163_p2)  }
   0xa   : > { %v1155_v13 = vld [vmem:[%s1565_s1 + $0x134] ss:$8 sps:$4 sm:$0xff] (!%p163_p2)   ;;  %v1158_v15 = vld [vmem:[%s1565_s1 + $0x130] ss:$8 sps:$4 sm:$0xff] (!%p163_p2)   ;;  %v1159_v16 = vld [vmem:[%s1565_s1 + $0x44] ss:$8 sps:$4 sm:$0xff] (!%p163_p2)  }
   0xb   : > { %622 = vmatpush1.bf16.msra.mxu1 (!%p163_p2), %v1145_v6  ;;  %v1161_v17 = vld [vmem:[%s1565_s1 + $0x144] ss:$8 sps:$4 sm:$0xff] (!%p163_p2)   ;;  %v1163_v18 = vld [vmem:[%s1565_s1 + $0x40] ss:$8 sps:$4 sm:$0xff] (!%p163_p2)   ;;  %v1165_v20 = vld [vmem:[%s1565_s1 + $0x54] ss:$8 sps:$4 sm:$0xff] (!%p163_p2)  }
   0xc   : > { %665 = vmatpush1.bf16.msra.mxu0 (!%p163_p2), %v1146_v7  ;;  %623 = vmatprep.subr.bf16.mxu1 (!%p163_p2), %v1147_v8  ;;  %v1164_v19 = vld [vmem:[%s1565_s1 + $0x140] ss:$8 sps:$4 sm:$0xff] (!%p163_p2)   ;;  %v1167_v21 = vld [vmem:[%s1565_s1 + $0x154] ss:$8 sps:$4 sm:$0xff] (!%p163_p2)   ;;  %v1169_v22 = vld [vmem:[%s1565_s1 + $0x50] ss:$8 sps:$4 sm:$0xff] (!%p163_p2)  }
   0xd   : > { %666 = vmatprep.subr.bf16.mxu0 %v1149_v9  ;;  %v1170_v23 = vld [vmem:[%s1565_s1 + $0x150] ss:$8 sps:$4 sm:$0xff]   ;;  %v1171_v24 = vld [vmem:[%s1565_s1 + $0x64] ss:$8 sps:$4 sm:$0xff]   ;;  %v1175_v26 = vld [vmem:[%s1565_s1 + $0x60] ss:$8 sps:$4 sm:$0xff]  }
   0xe   : > { %v1173_v25 = vld [vmem:[%s1565_s1 + $0x164] ss:$8 sps:$4 sm:$0xff]   ;;  %v1176_v27 = vld [vmem:[%s1565_s1 + $0x160] ss:$8 sps:$4 sm:$0xff]   ;;  %v1177_v28 = vld [vmem:[%s1565_s1 + $0x74] ss:$8 sps:$4 sm:$0xff]  }
   0xf   : > { %624 = vmatpush1.bf16.msra.mxu1 %v1151_v10  ;;  %v1179_v29 = vld [vmem:[%s1565_s1 + $0x174] ss:$8 sps:$4 sm:$0xff]   ;;  %v1181_v30 = vld [vmem:[%s1565_s1 + $0x70] ss:$8 sps:$4 sm:$0xff]   ;;  %v1183_v32 = vld [vmem:[%s1565_s1 + $0x84] ss:$8 sps:$4 sm:$0xff]  }
  0x10   : > { %667 = vmatpush1.bf16.msra.mxu0 %v1152_v11  ;;  %625 = vmatprep.subr.bf16.mxu1 %v1153_v12  ;;  %v1182_v31 = vld [vmem:[%s1565_s1 + $0x170] ss:$8 sps:$4 sm:$0xff]   ;;  %v1185_v33 = vld [vmem:[%s1565_s1 + $0x184] ss:$8 sps:$4 sm:$0xff]   ;;  %v1187_v34 = vld [vmem:[%s1565_s1 + $0x80] ss:$8 sps:$4 sm:$0xff]  }
  0x11   : > { %668 = vmatprep.subr.bf16.mxu0 %v1155_v13  ;;  %v1188_v35 = vld [vmem:[%s1565_s1 + $0x180] ss:$8 sps:$4 sm:$0xff]   ;;  %v1189_v36 = vld [vmem:[%s1565_s1 + $0x94] ss:$8 sps:$4 sm:$0xff]   ;;  %s1570_s16 = smov (!%p188_p3, %s1000_s16), 1  ;;  %vm942_vm4 = vcmask 72704  }
  0x12   : > { %v1191_v37 = vld [vmem:[%s1565_s1 + $0x194] ss:$8 sps:$4 sm:$0xff]   ;;  %v1193_v38 = vld [vmem:[%s1565_s1 + $0x90] ss:$8 sps:$4 sm:$0xff]   ;;  %v1195_v40 = vld [vmem:[%s1565_s1 + $0xa4] ss:$8 sps:$4 sm:$0xff]  }
  0x13   : > { %626 = vmatpush1.bf16.msra.mxu1 %v1157_v14  ;;  %v1194_v39 = vld [vmem:[%s1565_s1 + $0x190] ss:$8 sps:$4 sm:$0xff]   ;;  %v1197_v41 = vld [vmem:[%s1565_s1 + $0x1a4] ss:$8 sps:$4 sm:$0xff]   ;;  %s1095_s29 = sshll.u32 %s1570_s16, 5  ;;  %s1096_s14 = sshll.u32 %s1570_s16, 4 }
  0x14   : > { %669 = vmatpush1.bf16.msra.mxu0 %v1158_v15  ;;  %627 = vmatprep.subr.bf16.mxu1 %v1159_v16  ;;  %v1199_v42 = vld [vmem:[%s1565_s1 + $0xa0] ss:$8 sps:$4 sm:$0xff]   ;;  %v1201_v44 = vld [vmem:[%s1565_s1 + $0xb4] ss:$8 sps:$4 sm:$0xff]   ;;  %s1443_s12 = scalar_lea.vmem %s1564_s0, %s1095_s29  ;;  %v1205_v46 = vld [vmem:[%s1565_s1 + $0xb0] ss:$8 sps:$4 sm:$0xff]   ;;  %s197_s19 = scalar_lea.vmem %s1568_s4, %s1096_s14 }
  0x15   : > { %670 = vmatprep.subr.bf16.mxu0 %v1161_v17  ;;  %v1200_v43 = vld [vmem:[%s1565_s1 + $0x1a0] ss:$8 sps:$4 sm:$0xff]   ;;  %v1203_v45 = vld [vmem:[%s1565_s1 + $0x1b4] ss:$8 sps:$4 sm:$0xff]   ;;  %v1206_v47 = vld [vmem:[%s1565_s1 + $0x1b0] ss:$8 sps:$4 sm:$0xff]  }
  0x16   : > { %v1233_v48 = vld [vmem:[%s1443_s12 + $0x4] ss:$16 sps:$4 sm:$0xff]   ;;  %v1236_v51 = vld [vmem:[%s1443_s12 + $0xc] ss:$16 sps:$4 sm:$0xff]   ;;  %v1211_v52 = vld [vmem:[%s1565_s1 + $0xc0] ss:$8 sps:$4 sm:$0xff]  }
  0x17   : > { %628 = vmatpush1.bf16.msra.mxu1 %v1163_v18  ;;  %v1207_v49 = vld [vmem:[%s1565_s1 + $0xc4] ss:$8 sps:$4 sm:$0xff]   ;;  %v1212_v53 = vld [vmem:[%s1565_s1 + $0x1c0] ss:$8 sps:$4 sm:$0xff]   ;;  %651 = vmatprep.mubr.bf16.mxu1 %v1233_v48  ;;  %v1213_v54 = vld [vmem:[%s1565_s1 + $0xd4] ss:$8 sps:$4 sm:$0xff]  }
  0x18   : > { %671 = vmatpush1.bf16.msra.mxu0 %v1164_v19  ;;  %629 = vmatprep.subr.bf16.mxu1 %v1165_v20  ;;  %v1209_v50 = vld [vmem:[%s1565_s1 + $0x1c4] ss:$8 sps:$4 sm:$0xff]   ;;  %v1215_v55 = vld [vmem:[%s1565_s1 + $0x1d4] ss:$8 sps:$4 sm:$0xff]   ;;  %v1217_v56 = vld [vmem:[%s1565_s1 + $0xd0] ss:$8 sps:$4 sm:$0xff]   ;;  %v269_v20 = vlaneseq }
  0x19   : > { %672 = vmatprep.subr.bf16.mxu0 %v1167_v21  ;;  %694 = vmatprep.mubr.bf16.mxu0 %v1236_v51  ;;  %v1218_v57 = vld [vmem:[%s1565_s1 + $0x1d0] ss:$8 sps:$4 sm:$0xff]   ;;  %v1219_v58 = vld [vmem:[%s1565_s1 + $0xe4] ss:$8 sps:$4 sm:$0xff]   ;;  %v1223_v60 = vld [vmem:[%s1565_s1 + $0xe0] ss:$8 sps:$4 sm:$0xff]  }
  0x1a   : > { %v1221_v59 = vld [vmem:[%s1565_s1 + $0x1e4] ss:$8 sps:$4 sm:$0xff]   ;;  %v1224_v61 = vld [vmem:[%s1565_s1 + $0x1e0] ss:$8 sps:$4 sm:$0xff]   ;;  %v1225_v62 = vld [vmem:[%s1565_s1 + $0xf4] ss:$8 sps:$4 sm:$0xff]  }
  0x1b   : > { %630 = vmatpush1.bf16.msra.mxu1 %v1169_v22  ;;  %v1227_v63 = vld [vmem:[%s1565_s1 + $0x1f4] ss:$8 sps:$4 sm:$0xff]   ;;  %v1229_v0 = vld [vmem:[%s1565_s1 + $0xf0] ss:$8 sps:$4 sm:$0xff]   ;;  %v1237_v4 = vld [vmem:[%s1567_s3 + $0x40] sm:$0xff]   ;;  %v270_v21 = vshrl.u32 %v269_v20, 7 }
  0x1c   : > { %673 = vmatpush1.bf16.msra.mxu0 %v1170_v23  ;;  %631 = vmatprep.subr.bf16.mxu1 %v1171_v24  ;;  %v1230_v1 = vld [vmem:[%s1565_s1 + $0x1f0] ss:$8 sps:$4 sm:$0xff]   ;;  %v1238_v5 = vld [vmem:[%s1567_s3] sm:$0xff]   ;;  %v1239_v6 = vld [vmem:[%s1567_s3 + $0x48] sm:$0xff]  }
  0x1d   : > { %674 = vmatprep.subr.bf16.mxu0 %v1173_v25  ;;  %v1231_v2 = vld [vmem:[%s1443_s12] ss:$16 sps:$4 sm:$0xff]   ;;  %v1234_v3 = vld [vmem:[%s1443_s12 + $0x8] ss:$16 sps:$4 sm:$0xff]   ;;  %v271_v22 = vsub.s32 0, %v270_v21  ;;  %v275_v24 = vsub.s32 1, %v270_v21 }
  0x1e   : > { %v1240_v7 = vld [vmem:[%s1567_s3 + $0x8] sm:$0xff]   ;;  %v1241_v8 = vld [vmem:[%s1567_s3 + $0x50] sm:$0xff]   ;;  %v1243_v10 = vld [vmem:[%s1567_s3 + $0x58] sm:$0xff]  }
  0x1f   : > { %632 = vmatpush1.bf16.msra.mxu1 %v1175_v26  ;;  %v1242_v9 = vld [vmem:[%s1567_s3 + $0x10] sm:$0xff]   ;;  %v1244_v11 = vld [vmem:[%s1567_s3 + $0x18] sm:$0xff]   ;;  %v1245_v12 = vld [vmem:[%s1567_s3 + $0x60] sm:$0xff]  }
  0x20   : > { %675 = vmatpush1.bf16.msra.mxu0 %v1176_v27  ;;  %633 = vmatprep.subr.bf16.mxu1 %v1177_v28  ;;  %v1246_v13 = vld [vmem:[%s1567_s3 + $0x20] sm:$0xff]   ;;  %v1247_v14 = vld [vmem:[%s1567_s3 + $0x68] sm:$0xff]   ;;  %v1249_v16 = vld [vmem:[%s1567_s3 + $0x70] sm:$0xff]  }
  0x21   : > { %676 = vmatprep.subr.bf16.mxu0 %v1179_v29  ;;  %v1248_v15 = vld [vmem:[%s1567_s3 + $0x28] sm:$0xff]   ;;  %v1250_v17 = vld [vmem:[%s1567_s3 + $0x30] sm:$0xff]   ;;  %v1251_v18 = vld [vmem:[%s1567_s3 + $0x78] sm:$0xff]  }
  0x22   : > { %v1252_v19 = vld [vmem:[%s1567_s3 + $0x38] sm:$0xff]   ;;  %v267_v23 = vld [vmem:[%s1566_s2] sm:$0x3] }
  0x23   : > { %634 = vmatpush1.bf16.msra.mxu1 %v1181_v30  ;;  %v272_v25 = vrot.slane %v267_v23, %v271_v22  ;;  %v276_v26 = vrot.slane %v267_v23, %v275_v24 }
  0x24   : > { %677 = vmatpush1.bf16.msra.mxu0 %v1182_v31  ;;  %635 = vmatprep.subr.bf16.mxu1 %v1183_v32 }
  0x25   : > { %678 = vmatprep.subr.bf16.mxu0 %v1185_v33 }
  0x27   : > { %636 = vmatpush1.bf16.msra.mxu1 %v1187_v34 }
  0x28   : > { %679 = vmatpush1.bf16.msra.mxu0 %v1188_v35  ;;  %637 = vmatprep.subr.bf16.mxu1 %v1189_v36 }
  0x29   : > { %680 = vmatprep.subr.bf16.mxu0 %v1191_v37 }
  0x2b   : > { %638 = vmatpush1.bf16.msra.mxu1 %v1193_v38 }
  0x2c   : > { %681 = vmatpush1.bf16.msra.mxu0 %v1194_v39  ;;  %639 = vmatprep.subr.bf16.mxu1 %v1195_v40 }
  0x2d   : > { %682 = vmatprep.subr.bf16.mxu0 %v1197_v41 }
  0x2f   : > { %640 = vmatpush1.bf16.msra.mxu1 %v1199_v42 }
  0x30   : > { %683 = vmatpush1.bf16.msra.mxu0 %v1200_v43  ;;  %641 = vmatprep.subr.bf16.mxu1 %v1201_v44 }
  0x31   : > { %684 = vmatprep.subr.bf16.mxu0 %v1203_v45 }
  0x33   : > { %642 = vmatpush1.bf16.msra.mxu1 %v1205_v46 }
  0x34   : > { %685 = vmatpush1.bf16.msra.mxu0 %v1206_v47  ;;  %643 = vmatprep.subr.bf16.mxu1 %v1207_v49 }
  0x35   : > { %686 = vmatprep.subr.bf16.mxu0 %v1209_v50 }
  0x37   : > { %644 = vmatpush1.bf16.msra.mxu1 %v1211_v52 }
  0x38   : > { %687 = vmatpush1.bf16.msra.mxu0 %v1212_v53  ;;  %645 = vmatprep.subr.bf16.mxu1 %v1213_v54 }
  0x39   : > { %688 = vmatprep.subr.bf16.mxu0 %v1215_v55 }
  0x3b   : > { %646 = vmatpush1.bf16.msra.mxu1 %v1217_v56 }
  0x3c   : > { %689 = vmatpush1.bf16.msra.mxu0 %v1218_v57  ;;  %647 = vmatprep.subr.bf16.mxu1 %v1219_v58 }
  0x3d   : > { %690 = vmatprep.subr.bf16.mxu0 %v1221_v59 }
  0x3f   : > { %648 = vmatpush1.bf16.msra.mxu1 %v1223_v60 }
  0x40   : > { %691 = vmatpush1.bf16.msra.mxu0 %v1224_v61  ;;  %649 = vmatprep.subr.bf16.mxu1 %v1225_v62 }
  0x41   : > { %692 = vmatprep.subr.bf16.mxu0 %v1227_v63 }
  0x43   : > { %650 = vmatpush1.bf16.msra.mxu1 %v1229_v0 }
  0x44   : > { %693 = vmatpush1.bf16.msra.mxu0 %v1230_v1  ;;  %1097 = vmatprep.subr.bf16.mxu1 %v1237_v4 }
  0x46   : > { %652 = vmatmul.mubr.bf16.vlgmr.msra.gmra.mrb[0].mxu1 %v1231_v2 }
  0x47   : > { %695 = vmatmul.mubr.bf16.vlgmr.msra.gmra.mrb[0].mxu0 %v1234_v3  ;;  %1098 = vmatpush3.bf16.msra.mxu1 %v1238_v5 }
  0x48   : > { %1099 = vmatprep.subr.bf16.mxu1 %v1239_v6 }
  0x4b   : > { %1100 = vmatpush3.bf16.msra.mxu1 %v1240_v7 }
  0x4c   : > { %1101 = vmatprep.subr.bf16.mxu1 %v1241_v8 }
  0x4f   : > { %1102 = vmatpush3.bf16.msra.mxu1 %v1242_v9 }
  0x50   : > { %1103 = vmatprep.subr.bf16.mxu1 %v1243_v10 }
  0x53   : > { %1104 = vmatpush3.bf16.msra.mxu1 %v1244_v11 }
  0x54   : > { %1105 = vmatprep.subr.bf16.mxu1 %v1245_v12 }
  0x57   : > { %1106 = vmatpush3.bf16.msra.mxu1 %v1246_v13 }
  0x58   : > { %1107 = vmatprep.subr.bf16.mxu1 %v1247_v14 }
  0x5b   : > { %1108 = vmatpush3.bf16.msra.mxu1 %v1248_v15 }
  0x5c   : > { %1109 = vmatprep.subr.bf16.mxu1 %v1249_v16 }
  0x5f   : > { %1110 = vmatpush3.bf16.msra.mxu1 %v1250_v17 }
  0x60   : > { %1111 = vmatprep.subr.bf16.mxu1 %v1251_v18 }
  0x63   : > { %1112 = vmatpush3.bf16.msra.mxu1 %v1252_v19 }
 0x119   : > { %v653_v27 = vpop.f32.mrb[0].mxu1 }
 0x11a   : > { %v696_v28 = vpop.f32.mrb[0].mxu0  ;;  %v654_v29 = vadd.f32 %v653_v27, %v272_v25  ;;  %v655_v30 = vpop.f32.mrb[1].mxu1 }
 0x11b   : > { %v698_v31 = vpop.f32.mrb[1].mxu0  ;;  %v656_v32 = vadd.f32 %v655_v30, %v276_v26  ;;  %v657_v33 = vpop.f32.mrb[2].mxu1 }
 0x11c   : > { %v700_v34 = vpop.f32.mrb[2].mxu0  ;;  %v697_v35 = vadd.f32 %v696_v28, %v654_v29  ;;  %v658_v36 = vadd.f32 %v657_v33, %v272_v25  ;;  %v659_v37 = vpop.f32.mrb[3].mxu1 }
 0x11d   : > { %v702_v38 = vpop.f32.mrb[3].mxu0  ;;  %v699_v39 = vadd.f32 %v698_v31, %v656_v32  ;;  %v660_v40 = vadd.f32 %v659_v37, %v276_v26 }
 0x11e   : > { %v701_v41 = vadd.f32 %v700_v34, %v658_v36  ;;  %v721_v43 = vmul.f32 %v697_v35, %v697_v35 }
 0x11f   : > { %v703_v42 = vadd.f32 %v702_v38, %v660_v40  ;;  %v722_v46 = vmul.f32 %v699_v39, %v699_v39 }
 0x120   : > { %v705_v44 = vadd.f32 %v701_v41, %v697_v35  ;;  %v723_v45 = vmul.f32 %v701_v41, %v701_v41 }
 0x121   : > { %v712_v47 = vadd.f32 %v703_v42, %v699_v39  ;;  %v724_v48 = vmul.f32 %v703_v42, %v703_v42 }
 0x122   : > { %v706_v49 = vrot.slane %v705_v44, 4  ;;  %v725_v50 = vadd.f32 %v723_v45, %v721_v43 }
 0x123   : > { %v713_v51 = vrot.slane %v712_v47, 4  ;;  %v732_v52 = vadd.f32 %v724_v48, %v722_v46 }
 0x124   : > { %v707_v53 = vadd.f32 %v706_v49, %v705_v44  ;;  %v726_v54 = vrot.slane %v725_v50, 4 }
 0x125   : > { %v714_v55 = vadd.f32 %v713_v51, %v712_v47  ;;  %v733_v56 = vrot.slane %v732_v52, 4 }
 0x126   : > { %v708_v57 = vrot.slane %v707_v53, 2  ;;  %v727_v58 = vadd.f32 %v726_v54, %v725_v50 }
 0x127   : > { %v715_v59 = vrot.slane %v714_v55, 2  ;;  %v734_v60 = vadd.f32 %v733_v56, %v732_v52 }
 0x128   : > { %v709_v61 = vadd.f32 %v708_v57, %v707_v53  ;;  %v728_v62 = vrot.slane %v727_v58, 2 }
 0x129   : > { %v716_v63 = vadd.f32 %v715_v59, %v714_v55  ;;  %v735_v0 = vrot.slane %v734_v60, 2 }
 0x12a   : > { %v710_v1 = vrot.slane %v709_v61, 1  ;;  %v729_v2 = vadd.f32 %v728_v62, %v727_v58 }
 0x12b   : > { %v717_v3 = vrot.slane %v716_v63, 1  ;;  %v736_v4 = vadd.f32 %v735_v0, %v734_v60 }
 0x12c   : > { %v711_v5 = vadd.f32 %v710_v1, %v709_v61  ;;  %v730_v6 = vrot.slane %v729_v2, 1 }
 0x12d   : > { %v718_v7 = vadd.f32 %v717_v3, %v716_v63  ;;  %v737_v8 = vrot.slane %v736_v4, 1 }
 0x12e   : > { %v719_v9 = vmul.f32 0.0625, %v711_v5  ;;  %v731_v10 = vadd.f32 %v730_v6, %v729_v2 }
 0x12f   : > { %v720_v11 = vmul.f32 0.0625, %v718_v7  ;;  %v738_v12 = vadd.f32 %v737_v8, %v736_v4 }
 0x130   : > { %v739_v13 = vmul.f32 0.0625, %v731_v10  ;;  %v741_v14 = vmul.f32 %v719_v9, %v719_v9  ;;  %v751_v15 = vsub.f32 %v697_v35, %v719_v9  ;;  %v753_v16 = vsub.f32 %v701_v41, %v719_v9 }
 0x131   : > { %v740_v17 = vmul.f32 0.0625, %v738_v12  ;;  %v742_v18 = vmul.f32 %v720_v11, %v720_v11  ;;  %v754_v19 = vsub.f32 %v703_v42, %v720_v11  ;;  %v752_v20 = vsub.f32 %v699_v39, %v720_v11 }
 0x132   : > { %v743_v21 = vsub.f32 %v739_v13, %v741_v14 }
 0x133   : > { %v744_v22 = vsub.f32 %v740_v17, %v742_v18 }
 0x134   : > { %v745_v23 = vmax.f32 %v743_v21, 0.0 }
 0x135   : > { %v746_v24 = vmax.f32 %v744_v22, 0.0 }
 0x136   : > { %v747_v25 = vadd.f32 1e-05, %v745_v23 }
 0x137   : > { %v748_v26 = vadd.f32 1e-05, %v746_v24 }
 0x138   : > { %1253 = vrsqrt.f32 %v747_v25 }
 0x139   : > { %1255 = vrsqrt.f32 %v748_v26 }
 0x142   : > { %v1254_v27 = vpop.eup %1253 }
 0x143   : > { %v1256_v28 = vpop.eup %1255  ;;  %v757_v29 = vmul.f32 %v1254_v27, %v753_v16  ;;  %v755_v30 = vmul.f32 %v1254_v27, %v751_v15 }
 0x144   : > { %v758_v31 = vmul.f32 %v1256_v28, %v754_v19  ;;  %v756_v32 = vmul.f32 %v1256_v28, %v752_v20 }
 0x145   : > { %v765_v33 = vmul.f32 0.2, %v757_v29  ;;  %vm759_vm0 = vcmp.gt.f32.partialorder %v755_v30, 0.0  ;;  %vm761_vm1 = vcmp.gt.f32.partialorder %v757_v29, 0.0  ;;  %v763_v34 = vmul.f32 0.2, %v755_v30 }
 0x146   : > { %vm760_vm2 = vcmp.gt.f32.partialorder %v756_v32, 0.0  ;;  %vm762_vm3 = vcmp.gt.f32.partialorder %v758_v31, 0.0  ;;  %v764_v35 = vmul.f32 0.2, %v756_v32  ;;  %v766_v36 = vmul.f32 0.2, %v758_v31 }
 0x147   : > { %v767_v37 = vsel %vm759_vm0, %v755_v30, %v763_v34  ;;  %v769_v38 = vsel %vm761_vm1, %v757_v29, %v765_v33 }
 0x148   : > { %v768_v39 = vsel %vm760_vm2, %v756_v32, %v764_v35  ;;  %v770_v40 = vsel %vm762_vm3, %v758_v31, %v766_v36  ;;  %v771_v41 = vpack.c.bf16 %v769_v38, %v767_v37 }
 0x149   : > { %v772_v42 = vpack.c.bf16 %v770_v40, %v768_v39 }
 0x14b   : > { %933 = vmatprep.mubr.bf16.mxu1 %v772_v42 }
 0x14c   : > { %934 = vmatmul.mubr.bf16.vlgmr.msra.gmra.mrb[4].mxu1 %v771_v41 }
 0x21f   : > { %v1113_v43 = vpop.f32.mrb[4].mxu1 }
 0x220   : > { %v1114_v44 = vpop.f32.mrb[5].mxu1 }
 0x221   : > { %v1115_v45 = vadd.f32 %v1114_v44, %v1113_v43  ;;  %v1116_v46 = vpop.f32.mrb[6].mxu1 }
 0x222   : > { %v1117_v47 = vpop.f32.mrb[7].mxu1 }
 0x223   : > { %943 = vst.msk [vmem:[%s197_s19] sm:$0xff] %vm942_vm4, %v1115_v45  ;;  %v1118_v48 = vadd.f32 %v1117_v47, %v1116_v46 }
 0x225   : > { %944 = vst.msk [vmem:[%s197_s19 + $0x8] sm:$0xff] %vm942_vm4, %v1118_v48 }
 0x226 PF: > { %s14_s15 = sadd.s32 1, %s1263_s15  }
 0x227   : > { %p11_p4 = scmp.ge.s32.totalorder %s14_s15, 4  }
 0x229   :  { %13 = sbr.rel (!%p11_p4) target bundleno = 1 (0x1), region = 66 }

</bundles_post_ra>
